<compile_context>
chip_gen: v7x
topology: tpu7x:2x2x1
jax: 0.10.0
libtpu: 0.0.40
codegen_flags: <defaults>
</compile_context>

<pallas_src>
import functools

import jax
import jax.numpy as jnp
import numpy as np
from jax import lax
from jax.experimental import pallas as pl
from jax.experimental.pallas import tpu as pltpu

_EPS = 1e-5


def _basic_block_kernel(xpad_ref, *rest, W, P1pad, mid_off, has_residual,
                        use_bf16):
    if has_residual:
        (res_ref, w1_ref, b1_ref, w2_ref, b2_ref, mask_ref,
         out_ref, mid_ref) = rest
    else:
        (w1_ref, b1_ref, w2_ref, b2_ref, mask_ref, out_ref, mid_ref) = rest
        res_ref = None

    Wp = W + 2
    offs = tuple(kh * Wp + kw for kh in range(3) for kw in range(3))
    C2, midw = mid_ref.shape
    rdt = jnp.bfloat16 if use_bf16 else jnp.float32

    # ---- conv1 (BN1 scale folded into weights) + bias + relu ----------------
    # 9 accumulating per-tap matmuls; the RHS is read straight from the padded
    # input ref (no im2col patch materialization, no whole-image value).
    acc1 = None
    for t, off in enumerate(offs):
        rhs = xpad_ref[:, off:off + P1pad].astype(rdt)
        part = jnp.dot(w1_ref[t], rhs, preferred_element_type=jnp.float32)
        acc1 = part if acc1 is None else acc1 + part
    # The mask zeroes the junk columns (which double as conv2's horizontal
    # zero padding) and the [P1, P1pad) lane tail.
    out1 = jnp.maximum(acc1 + b1_ref[...], 0.0) * mask_ref[...]

    # Stash conv1 output lane-aligned at mid_off; zero the two halo strips
    # (one aligned vreg store each).  Re-done every step so the kernel stays
    # correct if the "parallel" axis is sharded across TensorCores.
    mid_ref[:, 0:mid_off] = jnp.zeros((C2, mid_off), jnp.float32)
    mid_ref[:, mid_off:mid_off + P1pad] = out1
    mid_ref[:, mid_off + P1pad:midw] = jnp.zeros(
        (C2, midw - mid_off - P1pad), jnp.float32)

    # ---- conv2 (BN2 scale folded) + bias + residual + relu ------------------
    base = mid_off - (W + 3)          # mid lane of conv2-padded position 0
    acc2 = None
    for t, off in enumerate(offs):
        rhs = mid_ref[:, base + off:base + off + P1pad].astype(rdt)
        part = jnp.dot(w2_ref[t], rhs, preferred_element_type=jnp.float32)
        acc2 = part if acc2 is None else acc2 + part
    out2 = acc2 + b2_ref[...]
    if res_ref is None:
        # residual = x: interior of the already-resident padded input block.
        out2 = out2 + xpad_ref[:, W + 3:W + 3 + P1pad]
    else:
        out2 = out2 + res_ref[...]
    out_ref[...] = jnp.maximum(out2, 0.0)


def _round_up(x, m):
    return -(-x // m) * m


def _blockdiag_taps(w, scale, dtype):
    """(Co, Ci, 3, 3) conv weight * per-out-channel BN scale ->
    (9, 2*Co, 2*Ci) block-diagonal per-tap matrices for the 2-image fold."""
    ws = w * scale[:, None, None, None]
    taps = jnp.transpose(ws, (2, 3, 0, 1)).reshape(9, ws.shape[0], ws.shape[1])
    z = jnp.zeros_like(taps)
    top = jnp.concatenate([taps, z], axis=2)
    bot = jnp.concatenate([z, taps], axis=2)
    return jnp.concatenate([top, bot], axis=1).astype(dtype)


def basic_block_forward(x_nchw, params, residual=None, use_bf16=False):
    """Pallas BasicBlock.forward (stride=1, dilation=1, eval-mode BN).

    x_nchw: (N, Cin, H, W) float32.  Returns (N, Cout, H, W) float32.
    """
    (w1, g1, be1, rm1, rv1, w2, g2, be2, rm2, rv2) = params
    N, Cin, H, W = x_nchw.shape
    Cout = w1.shape[0]
    assert w1.shape == (Cout, Cin, 3, 3) and w2.shape == (Cout, Cout, 3, 3)
    if residual is None:
        assert Cin == Cout, "residual = x requires inplanes == planes"

    FOLD = 2                            # images folded into the sublane axis
    G = -(-N // FOLD)                   # grid steps (batch padded to even)
    Np = G * FOLD
    C1, C2 = FOLD * Cin, FOLD * Cout

    Wp = W + 2
    P1 = H * Wp                         # output positions incl. junk columns
    P1pad = _round_up(P1, 128)          # lane-dense output width
    max_off = 2 * Wp + 2                # largest 3x3 tap offset
    PXpad = _round_up(max_off + P1pad, 128)
    P2 = (H + 2) * Wp                   # padded image, flattened
    assert PXpad >= P2
    mid_off = _round_up(W + 3, 128)     # lane-aligned conv1-output store base
    midw = _round_up(mid_off - (W + 3) + max_off + P1pad, 128)

    # Fold eval-mode BN into a per-channel scale (-> weights) and bias.
    s1 = g1 / jnp.sqrt(rv1 + _EPS)
    b1 = be1 - rm1 * s1
    s2 = g2 / jnp.sqrt(rv2 + _EPS)
    b2 = be2 - rm2 * s2

    w_dtype = jnp.bfloat16 if use_bf16 else jnp.float32
    w1bd = _blockdiag_taps(w1, s1, w_dtype)               # (9, C2, C1)
    w2bd = _blockdiag_taps(w2, s2, w_dtype)               # (9, C2, C2)
    b1c = jnp.concatenate([b1, b1]).reshape(C2, 1).astype(jnp.float32)
    b2c = jnp.concatenate([b2, b2]).reshape(C2, 1).astype(jnp.float32)

    # Zero-padded input, spatial dims flattened into lanes, padded to PXpad
    # lanes, pairs of images packed into the sublane (channel) axis.
    xp = jnp.pad(x_nchw.astype(jnp.float32),
                 ((0, Np - N), (0, 0), (1, 1), (1, 1))).reshape(Np, Cin, P2)
    xp = jnp.pad(xp, ((0, 0), (0, 0), (0, PXpad - P2)))
    xpack = xp.reshape(G, C1, PXpad)

    # Valid-column mask in padded-row space: (p % Wp) < W and p < P1.
    lanes = np.arange(P1pad)
    mask = jnp.asarray(((lanes < P1) & (lanes % Wp < W)).astype(np.float32))
    mask = mask.reshape(1, P1pad)

    inputs = [xpack]
    in_specs = [pl.BlockSpec((None, C1, PXpad), lambda g: (g, 0, 0))]
    if residual is not None:
        r = jnp.pad(residual.astype(jnp.float32),
                    ((0, Np - N), (0, 0), (0, 0), (0, Wp - W)))
        r = r.reshape(Np, Cout, P1)
        r = jnp.pad(r, ((0, 0), (0, 0), (0, P1pad - P1))).reshape(G, C2, P1pad)
        inputs.append(r)
        in_specs.append(pl.BlockSpec((None, C2, P1pad), lambda g: (g, 0, 0)))
    inputs += [w1bd, b1c, w2bd, b2c, mask]
    in_specs += [
        pl.BlockSpec((9, C2, C1), lambda g: (0, 0, 0)),
        pl.BlockSpec((C2, 1), lambda g: (0, 0)),
        pl.BlockSpec((9, C2, C2), lambda g: (0, 0, 0)),
        pl.BlockSpec((C2, 1), lambda g: (0, 0)),
        pl.BlockSpec((1, P1pad), lambda g: (0, 0)),
    ]

    kernel = functools.partial(
        _basic_block_kernel, W=W, P1pad=P1pad, mid_off=mid_off,
        has_residual=residual is not None, use_bf16=use_bf16)

    wbytes = 2 if use_bf16 else 4
    flops = G * 2 * 9 * P1pad * (C2 * C1 + C2 * C2)
    bytes_accessed = int(
        xpack.size * 4 + G * C2 * P1pad * 4
        + (w1bd.size + w2bd.size) * wbytes
        + (b1c.size + b2c.size + mask.size) * 4
        + (G * C2 * P1pad * 4 if residual is not None else 0))

    out_pack = pl.pallas_call(
        kernel,
        out_shape=jax.ShapeDtypeStruct((G, C2, P1pad), jnp.float32),
        grid=(G,),
        in_specs=in_specs,
        out_specs=pl.BlockSpec((None, C2, P1pad), lambda g: (g, 0, 0)),
        scratch_shapes=[
            pltpu.VMEM((C2, midw), jnp.float32),   # padded conv1 output
        ],
        compiler_params=pltpu.CompilerParams(
            dimension_semantics=("parallel",),
            vmem_limit_bytes=32 * 1024 * 1024),
        cost_estimate=pl.CostEstimate(flops=flops, transcendentals=0,
                                      bytes_accessed=bytes_accessed),
    )(*inputs)

    # Unpack the batch fold, drop pad lanes and the 2 junk columns per row.
    out = out_pack.reshape(Np, Cout, P1pad)[:N, :, :P1]
    return out.reshape(N, Cout, H, Wp)[:, :, :, :W]


def basic_block_reference(x, params, residual=None):
    """Pure-JAX reference (matches PyTorch eval-mode semantics)."""
    (w1, g1, be1, rm1, rv1, w2, g2, be2, rm2, rv2) = params
    if residual is None:
        residual = x

    def conv(inp, w):
        return lax.conv_general_dilated(
            inp, w, window_strides=(1, 1), padding=((1, 1), (1, 1)),
            dimension_numbers=("NCHW", "OIHW", "NCHW"))

    def bn(inp, g, be, rm, rv):
        return ((inp - rm[None, :, None, None]) /
                jnp.sqrt(rv + _EPS)[None, :, None, None] *
                g[None, :, None, None] + be[None, :, None, None])

    out = jnp.maximum(bn(conv(x, w1), g1, be1, rm1, rv1), 0.0)
    out = bn(conv(out, w2), g2, be2, rm2, rv2)
    return jnp.maximum(out + residual, 0.0)


if __name__ == "__main__":
    N, C, H, W = 2, 4, 16, 16          # inplanes == planes == 4, stride=1
    inplanes = planes = C

    key = jax.random.PRNGKey(0)
    ks = jax.random.split(key, 14)
    x = jax.random.normal(ks[0], (N, C, H, W), jnp.float32)

    w1 = 0.1 * jax.random.normal(ks[1], (planes, inplanes, 3, 3), jnp.float32)
    g1 = 1.0 + 0.1 * jax.random.normal(ks[2], (planes,), jnp.float32)
    be1 = 0.1 * jax.random.normal(ks[3], (planes,), jnp.float32)
    rm1 = 0.1 * jax.random.normal(ks[4], (planes,), jnp.float32)
    rv1 = jax.random.uniform(ks[5], (planes,), jnp.float32, 0.5, 1.5)

    w2 = 0.1 * jax.random.normal(ks[6], (planes, planes, 3, 3), jnp.float32)
    g2 = 1.0 + 0.1 * jax.random.normal(ks[7], (planes,), jnp.float32)
    be2 = 0.1 * jax.random.normal(ks[8], (planes,), jnp.float32)
    rm2 = 0.1 * jax.random.normal(ks[9], (planes,), jnp.float32)
    rv2 = jax.random.uniform(ks[10], (planes,), jnp.float32, 0.5, 1.5)

    params = (w1, g1, be1, rm1, rv1, w2, g2, be2, rm2, rv2)

    ref = jax.block_until_ready(basic_block_reference(x, params))

    # f32 path, residual=None (residual read from the resident input block).
    out = jax.block_until_ready(basic_block_forward(x, params))
    np.testing.assert_allclose(np.asarray(out), np.asarray(ref),
                               rtol=1e-4, atol=1e-4)

    # f32 path with an explicit residual tensor.
    res = jax.random.normal(ks[11], (N, planes, H, W), jnp.float32)
    out_r = jax.block_until_ready(basic_block_forward(x, params, residual=res))
    ref_r = jax.block_until_ready(basic_block_reference(x, params, residual=res))
    np.testing.assert_allclose(np.asarray(out_r), np.asarray(ref_r),
                               rtol=1e-4, atol=1e-4)

    # bf16 MXU path (v6e/v7x); f32 accumulation, looser tolerance.
    out_bf = jax.block_until_ready(basic_block_forward(x, params, use_bf16=True))
    np.testing.assert_allclose(np.asarray(out_bf), np.asarray(ref),
                               rtol=8e-2, atol=8e-2)

    # Odd batch: exercises the zero-image batch pad and a >=2-step grid.
    x3 = jax.random.normal(ks[12], (3, C, H, W), jnp.float32)
    out3 = jax.block_until_ready(basic_block_forward(x3, params))
    ref3 = jax.block_until_ready(basic_block_reference(x3, params))
    np.testing.assert_allclose(np.asarray(out3), np.asarray(ref3),
                               rtol=1e-4, atol=1e-4)

    print("KERNEL_OK")
</pallas_src>

<mosaic_0001>
module attributes {stable_mosaic.version = 11 : i64} {
  func.func @_basic_block_kernel(%arg0: i32, %arg1: memref<1x8x512xf32, #tpu.memory_space<vmem>>, %arg2: memref<9x8x8xf32, #tpu.memory_space<vmem>>, %arg3: memref<8x1xf32, #tpu.memory_space<vmem>>, %arg4: memref<9x8x8xf32, #tpu.memory_space<vmem>>, %arg5: memref<8x1xf32, #tpu.memory_space<vmem>>, %arg6: memref<1x384xf32, #tpu.memory_space<vmem>>, %arg7: memref<1x8x384xf32, #tpu.memory_space<vmem>>, %arg8: memref<8x640xf32, #tpu.memory_space<vmem>>) attributes {dimension_semantics = [#tpu.dimension_semantics<parallel>], iteration_bounds = array<i64: 1>, scalar_prefetch = 0 : i64, scratch_operands = 1 : i64, tpu.core_type = #tpu.core_type<tc>, window_params = [{transform_indices = @transform_0, window_bounds = array<i64: 1, 8, 512>}, {pipeline_mode = #tpu.pipeline_mode<synchronous>, transform_indices = @transform_1, window_bounds = array<i64: 9, 8, 8>}, {pipeline_mode = #tpu.pipeline_mode<synchronous>, transform_indices = @transform_2, window_bounds = array<i64: 8, 1>}, {pipeline_mode = #tpu.pipeline_mode<synchronous>, transform_indices = @transform_3, window_bounds = array<i64: 9, 8, 8>}, {pipeline_mode = #tpu.pipeline_mode<synchronous>, transform_indices = @transform_4, window_bounds = array<i64: 8, 1>}, {pipeline_mode = #tpu.pipeline_mode<synchronous>, transform_indices = @transform_5, window_bounds = array<i64: 1, 384>}, {transform_indices = @transform_6, window_bounds = array<i64: 1, 8, 384>}]} {
    %c0 = arith.constant 0 : index
    %c0_0 = arith.constant 0 : index
    %c0_1 = arith.constant 0 : index
    %0 = vector.load %arg1[%c0, %c0_0, %c0_1] : memref<1x8x512xf32, #tpu.memory_space<vmem>>, vector<1x8x384xf32>
    %1 = vector.shape_cast %0 : vector<1x8x384xf32> to vector<8x384xf32>
    %c0_2 = arith.constant 0 : index
    %c0_3 = arith.constant 0 : index
    %c0_4 = arith.constant 0 : index
    %2 = vector.load %arg2[%c0_2, %c0_3, %c0_4] : memref<9x8x8xf32, #tpu.memory_space<vmem>>, vector<1x8x8xf32>
    %3 = vector.shape_cast %2 : vector<1x8x8xf32> to vector<8x8xf32>
    %cst = arith.constant dense<0.000000e+00> : vector<8x384xf32>
    %4 = tpu.matmul %3, %1, %cst {dimension_numbers = #tpu.dot_dimension_numbers<[1], [0], [0], [1], [0, 0, 1, 1], [], []>} : vector<8x8xf32>, vector<8x384xf32>, vector<8x384xf32> -> vector<8x384xf32>
    %c0_5 = arith.constant 0 : index
    %c0_6 = arith.constant 0 : index
    %c1 = arith.constant 1 : index
    %5 = vector.load %arg1[%c0_5, %c0_6, %c1] : memref<1x8x512xf32, #tpu.memory_space<vmem>>, vector<1x8x384xf32>
    %6 = vector.shape_cast %5 : vector<1x8x384xf32> to vector<8x384xf32>
    %c1_7 = arith.constant 1 : index
    %c0_8 = arith.constant 0 : index
    %c0_9 = arith.constant 0 : index
    %7 = vector.load %arg2[%c1_7, %c0_8, %c0_9] : memref<9x8x8xf32, #tpu.memory_space<vmem>>, vector<1x8x8xf32>
    %8 = vector.shape_cast %7 : vector<1x8x8xf32> to vector<8x8xf32>
    %cst_10 = arith.constant dense<0.000000e+00> : vector<8x384xf32>
    %9 = tpu.matmul %8, %6, %cst_10 {dimension_numbers = #tpu.dot_dimension_numbers<[1], [0], [0], [1], [0, 0, 1, 1], [], []>} : vector<8x8xf32>, vector<8x384xf32>, vector<8x384xf32> -> vector<8x384xf32>
    %10 = arith.addf %4, %9 : vector<8x384xf32>
    %c0_11 = arith.constant 0 : index
    %c0_12 = arith.constant 0 : index
    %c2 = arith.constant 2 : index
    %11 = vector.load %arg1[%c0_11, %c0_12, %c2] : memref<1x8x512xf32, #tpu.memory_space<vmem>>, vector<1x8x384xf32>
    %12 = vector.shape_cast %11 : vector<1x8x384xf32> to vector<8x384xf32>
    %c2_13 = arith.constant 2 : index
    %c0_14 = arith.constant 0 : index
    %c0_15 = arith.constant 0 : index
    %13 = vector.load %arg2[%c2_13, %c0_14, %c0_15] : memref<9x8x8xf32, #tpu.memory_space<vmem>>, vector<1x8x8xf32>
    %14 = vector.shape_cast %13 : vector<1x8x8xf32> to vector<8x8xf32>
    %cst_16 = arith.constant dense<0.000000e+00> : vector<8x384xf32>
    %15 = tpu.matmul %14, %12, %cst_16 {dimension_numbers = #tpu.dot_dimension_numbers<[1], [0], [0], [1], [0, 0, 1, 1], [], []>} : vector<8x8xf32>, vector<8x384xf32>, vector<8x384xf32> -> vector<8x384xf32>
    %16 = arith.addf %10, %15 : vector<8x384xf32>
    %c0_17 = arith.constant 0 : index
    %c0_18 = arith.constant 0 : index
    %c18 = arith.constant 18 : index
    %17 = vector.load %arg1[%c0_17, %c0_18, %c18] : memref<1x8x512xf32, #tpu.memory_space<vmem>>, vector<1x8x384xf32>
    %18 = vector.shape_cast %17 : vector<1x8x384xf32> to vector<8x384xf32>
    %c3 = arith.constant 3 : index
    %c0_19 = arith.constant 0 : index
    %c0_20 = arith.constant 0 : index
    %19 = vector.load %arg2[%c3, %c0_19, %c0_20] : memref<9x8x8xf32, #tpu.memory_space<vmem>>, vector<1x8x8xf32>
    %20 = vector.shape_cast %19 : vector<1x8x8xf32> to vector<8x8xf32>
    %cst_21 = arith.constant dense<0.000000e+00> : vector<8x384xf32>
    %21 = tpu.matmul %20, %18, %cst_21 {dimension_numbers = #tpu.dot_dimension_numbers<[1], [0], [0], [1], [0, 0, 1, 1], [], []>} : vector<8x8xf32>, vector<8x384xf32>, vector<8x384xf32> -> vector<8x384xf32>
    %22 = arith.addf %16, %21 : vector<8x384xf32>
    %c0_22 = arith.constant 0 : index
    %c0_23 = arith.constant 0 : index
    %c19 = arith.constant 19 : index
    %23 = vector.load %arg1[%c0_22, %c0_23, %c19] : memref<1x8x512xf32, #tpu.memory_space<vmem>>, vector<1x8x384xf32>
    %24 = vector.shape_cast %23 : vector<1x8x384xf32> to vector<8x384xf32>
    %c4 = arith.constant 4 : index
    %c0_24 = arith.constant 0 : index
    %c0_25 = arith.constant 0 : index
    %25 = vector.load %arg2[%c4, %c0_24, %c0_25] : memref<9x8x8xf32, #tpu.memory_space<vmem>>, vector<1x8x8xf32>
    %26 = vector.shape_cast %25 : vector<1x8x8xf32> to vector<8x8xf32>
    %cst_26 = arith.constant dense<0.000000e+00> : vector<8x384xf32>
    %27 = tpu.matmul %26, %24, %cst_26 {dimension_numbers = #tpu.dot_dimension_numbers<[1], [0], [0], [1], [0, 0, 1, 1], [], []>} : vector<8x8xf32>, vector<8x384xf32>, vector<8x384xf32> -> vector<8x384xf32>
    %28 = arith.addf %22, %27 : vector<8x384xf32>
    %c0_27 = arith.constant 0 : index
    %c0_28 = arith.constant 0 : index
    %c20 = arith.constant 20 : index
    %29 = vector.load %arg1[%c0_27, %c0_28, %c20] : memref<1x8x512xf32, #tpu.memory_space<vmem>>, vector<1x8x384xf32>
    %30 = vector.shape_cast %29 : vector<1x8x384xf32> to vector<8x384xf32>
    %c5 = arith.constant 5 : index
    %c0_29 = arith.constant 0 : index
    %c0_30 = arith.constant 0 : index
    %31 = vector.load %arg2[%c5, %c0_29, %c0_30] : memref<9x8x8xf32, #tpu.memory_space<vmem>>, vector<1x8x8xf32>
    %32 = vector.shape_cast %31 : vector<1x8x8xf32> to vector<8x8xf32>
    %cst_31 = arith.constant dense<0.000000e+00> : vector<8x384xf32>
    %33 = tpu.matmul %32, %30, %cst_31 {dimension_numbers = #tpu.dot_dimension_numbers<[1], [0], [0], [1], [0, 0, 1, 1], [], []>} : vector<8x8xf32>, vector<8x384xf32>, vector<8x384xf32> -> vector<8x384xf32>
    %34 = arith.addf %28, %33 : vector<8x384xf32>
    %c0_32 = arith.constant 0 : index
    %c0_33 = arith.constant 0 : index
    %c36 = arith.constant 36 : index
    %35 = vector.load %arg1[%c0_32, %c0_33, %c36] : memref<1x8x512xf32, #tpu.memory_space<vmem>>, vector<1x8x384xf32>
    %36 = vector.shape_cast %35 : vector<1x8x384xf32> to vector<8x384xf32>
    %c6 = arith.constant 6 : index
    %c0_34 = arith.constant 0 : index
    %c0_35 = arith.constant 0 : index
    %37 = vector.load %arg2[%c6, %c0_34, %c0_35] : memref<9x8x8xf32, #tpu.memory_space<vmem>>, vector<1x8x8xf32>
    %38 = vector.shape_cast %37 : vector<1x8x8xf32> to vector<8x8xf32>
    %cst_36 = arith.constant dense<0.000000e+00> : vector<8x384xf32>
    %39 = tpu.matmul %38, %36, %cst_36 {dimension_numbers = #tpu.dot_dimension_numbers<[1], [0], [0], [1], [0, 0, 1, 1], [], []>} : vector<8x8xf32>, vector<8x384xf32>, vector<8x384xf32> -> vector<8x384xf32>
    %40 = arith.addf %34, %39 : vector<8x384xf32>
    %c0_37 = arith.constant 0 : index
    %c0_38 = arith.constant 0 : index
    %c37 = arith.constant 37 : index
    %41 = vector.load %arg1[%c0_37, %c0_38, %c37] : memref<1x8x512xf32, #tpu.memory_space<vmem>>, vector<1x8x384xf32>
    %42 = vector.shape_cast %41 : vector<1x8x384xf32> to vector<8x384xf32>
    %c7 = arith.constant 7 : index
    %c0_39 = arith.constant 0 : index
    %c0_40 = arith.constant 0 : index
    %43 = vector.load %arg2[%c7, %c0_39, %c0_40] : memref<9x8x8xf32, #tpu.memory_space<vmem>>, vector<1x8x8xf32>
    %44 = vector.shape_cast %43 : vector<1x8x8xf32> to vector<8x8xf32>
    %cst_41 = arith.constant dense<0.000000e+00> : vector<8x384xf32>
    %45 = tpu.matmul %44, %42, %cst_41 {dimension_numbers = #tpu.dot_dimension_numbers<[1], [0], [0], [1], [0, 0, 1, 1], [], []>} : vector<8x8xf32>, vector<8x384xf32>, vector<8x384xf32> -> vector<8x384xf32>
    %46 = arith.addf %40, %45 : vector<8x384xf32>
    %c0_42 = arith.constant 0 : index
    %c0_43 = arith.constant 0 : index
    %c38 = arith.constant 38 : index
    %47 = vector.load %arg1[%c0_42, %c0_43, %c38] : memref<1x8x512xf32, #tpu.memory_space<vmem>>, vector<1x8x384xf32>
    %48 = vector.shape_cast %47 : vector<1x8x384xf32> to vector<8x384xf32>
    %c8 = arith.constant 8 : index
    %c0_44 = arith.constant 0 : index
    %c0_45 = arith.constant 0 : index
    %49 = vector.load %arg2[%c8, %c0_44, %c0_45] : memref<9x8x8xf32, #tpu.memory_space<vmem>>, vector<1x8x8xf32>
    %50 = vector.shape_cast %49 : vector<1x8x8xf32> to vector<8x8xf32>
    %cst_46 = arith.constant dense<0.000000e+00> : vector<8x384xf32>
    %51 = tpu.matmul %50, %48, %cst_46 {dimension_numbers = #tpu.dot_dimension_numbers<[1], [0], [0], [1], [0, 0, 1, 1], [], []>} : vector<8x8xf32>, vector<8x384xf32>, vector<8x384xf32> -> vector<8x384xf32>
    %52 = arith.addf %46, %51 : vector<8x384xf32>
    %c0_47 = arith.constant 0 : index
    %c0_48 = arith.constant 0 : index
    %53 = vector.load %arg3[%c0_47, %c0_48] : memref<8x1xf32, #tpu.memory_space<vmem>>, vector<8x1xf32>
    %54 = vector.broadcast %53 : vector<8x1xf32> to vector<8x384xf32>
    %55 = arith.addf %52, %54 : vector<8x384xf32>
    %cst_49 = arith.constant 0.000000e+00 : f32
    %56 = vector.broadcast %cst_49 : f32 to vector<8x384xf32>
    %57 = arith.maximumf %55, %56 : vector<8x384xf32>
    %c0_50 = arith.constant 0 : index
    %c0_51 = arith.constant 0 : index
    %58 = vector.load %arg6[%c0_50, %c0_51] : memref<1x384xf32, #tpu.memory_space<vmem>>, vector<1x384xf32>
    %59 = vector.broadcast %58 : vector<1x384xf32> to vector<8x384xf32>
    %60 = arith.mulf %57, %59 : vector<8x384xf32>
    %cst_52 = arith.constant 0.000000e+00 : f32
    %61 = vector.broadcast %cst_52 : f32 to vector<8x128xf32>
    %c0_53 = arith.constant 0 : index
    %c0_54 = arith.constant 0 : index
    %62 = vector.load %arg8[%c0_53, %c0_54] : memref<8x640xf32, #tpu.memory_space<vmem>>, vector<8x128xf32>
    tpu.vector_store %arg8[%c0_53, %c0_54], %61 {strides = array<i32>} : memref<8x640xf32, #tpu.memory_space<vmem>>, vector<8x128xf32>,
    %c0_55 = arith.constant 0 : index
    %c128 = arith.constant 128 : index
    %63 = vector.load %arg8[%c0_55, %c128] : memref<8x640xf32, #tpu.memory_space<vmem>>, vector<8x384xf32>
    tpu.vector_store %arg8[%c0_55, %c128], %60 {strides = array<i32>} : memref<8x640xf32, #tpu.memory_space<vmem>>, vector<8x384xf32>,
    %cst_56 = arith.constant 0.000000e+00 : f32
    %64 = vector.broadcast %cst_56 : f32 to vector<8x128xf32>
    %c0_57 = arith.constant 0 : index
    %c512 = arith.constant 512 : index
    %65 = vector.load %arg8[%c0_57, %c512] : memref<8x640xf32, #tpu.memory_space<vmem>>, vector<8x128xf32>
    tpu.vector_store %arg8[%c0_57, %c512], %64 {strides = array<i32>} : memref<8x640xf32, #tpu.memory_space<vmem>>, vector<8x128xf32>,
    %c0_58 = arith.constant 0 : index
    %c109 = arith.constant 109 : index
    %66 = vector.load %arg8[%c0_58, %c109] : memref<8x640xf32, #tpu.memory_space<vmem>>, vector<8x384xf32>
    %c0_59 = arith.constant 0 : index
    %c0_60 = arith.constant 0 : index
    %c0_61 = arith.constant 0 : index
    %67 = vector.load %arg4[%c0_59, %c0_60, %c0_61] : memref<9x8x8xf32, #tpu.memory_space<vmem>>, vector<1x8x8xf32>
    %68 = vector.shape_cast %67 : vector<1x8x8xf32> to vector<8x8xf32>
    %cst_62 = arith.constant dense<0.000000e+00> : vector<8x384xf32>
    %69 = tpu.matmul %68, %66, %cst_62 {dimension_numbers = #tpu.dot_dimension_numbers<[1], [0], [0], [1], [0, 0, 1, 1], [], []>} : vector<8x8xf32>, vector<8x384xf32>, vector<8x384xf32> -> vector<8x384xf32>
    %c0_63 = arith.constant 0 : index
    %c110 = arith.constant 110 : index
    %70 = vector.load %arg8[%c0_63, %c110] : memref<8x640xf32, #tpu.memory_space<vmem>>, vector<8x384xf32>
    %c1_64 = arith.constant 1 : index
    %c0_65 = arith.constant 0 : index
    %c0_66 = arith.constant 0 : index
    %71 = vector.load %arg4[%c1_64, %c0_65, %c0_66] : memref<9x8x8xf32, #tpu.memory_space<vmem>>, vector<1x8x8xf32>
    %72 = vector.shape_cast %71 : vector<1x8x8xf32> to vector<8x8xf32>
    %cst_67 = arith.constant dense<0.000000e+00> : vector<8x384xf32>
    %73 = tpu.matmul %72, %70, %cst_67 {dimension_numbers = #tpu.dot_dimension_numbers<[1], [0], [0], [1], [0, 0, 1, 1], [], []>} : vector<8x8xf32>, vector<8x384xf32>, vector<8x384xf32> -> vector<8x384xf32>
    %74 = arith.addf %69, %73 : vector<8x384xf32>
    %c0_68 = arith.constant 0 : index
    %c111 = arith.constant 111 : index
    %75 = vector.load %arg8[%c0_68, %c111] : memref<8x640xf32, #tpu.memory_space<vmem>>, vector<8x384xf32>
    %c2_69 = arith.constant 2 : index
    %c0_70 = arith.constant 0 : index
    %c0_71 = arith.constant 0 : index
    %76 = vector.load %arg4[%c2_69, %c0_70, %c0_71] : memref<9x8x8xf32, #tpu.memory_space<vmem>>, vector<1x8x8xf32>
    %77 = vector.shape_cast %76 : vector<1x8x8xf32> to vector<8x8xf32>
    %cst_72 = arith.constant dense<0.000000e+00> : vector<8x384xf32>
    %78 = tpu.matmul %77, %75, %cst_72 {dimension_numbers = #tpu.dot_dimension_numbers<[1], [0], [0], [1], [0, 0, 1, 1], [], []>} : vector<8x8xf32>, vector<8x384xf32>, vector<8x384xf32> -> vector<8x384xf32>
    %79 = arith.addf %74, %78 : vector<8x384xf32>
    %c0_73 = arith.constant 0 : index
    %c127 = arith.constant 127 : index
    %80 = vector.load %arg8[%c0_73, %c127] : memref<8x640xf32, #tpu.memory_space<vmem>>, vector<8x384xf32>
    %c3_74 = arith.constant 3 : index
    %c0_75 = arith.constant 0 : index
    %c0_76 = arith.constant 0 : index
    %81 = vector.load %arg4[%c3_74, %c0_75, %c0_76] : memref<9x8x8xf32, #tpu.memory_space<vmem>>, vector<1x8x8xf32>
    %82 = vector.shape_cast %81 : vector<1x8x8xf32> to vector<8x8xf32>
    %cst_77 = arith.constant dense<0.000000e+00> : vector<8x384xf32>
    %83 = tpu.matmul %82, %80, %cst_77 {dimension_numbers = #tpu.dot_dimension_numbers<[1], [0], [0], [1], [0, 0, 1, 1], [], []>} : vector<8x8xf32>, vector<8x384xf32>, vector<8x384xf32> -> vector<8x384xf32>
    %84 = arith.addf %79, %83 : vector<8x384xf32>
    %c0_78 = arith.constant 0 : index
    %c128_79 = arith.constant 128 : index
    %85 = vector.load %arg8[%c0_78, %c128_79] : memref<8x640xf32, #tpu.memory_space<vmem>>, vector<8x384xf32>
    %c4_80 = arith.constant 4 : index
    %c0_81 = arith.constant 0 : index
    %c0_82 = arith.constant 0 : index
    %86 = vector.load %arg4[%c4_80, %c0_81, %c0_82] : memref<9x8x8xf32, #tpu.memory_space<vmem>>, vector<1x8x8xf32>
    %87 = vector.shape_cast %86 : vector<1x8x8xf32> to vector<8x8xf32>
    %cst_83 = arith.constant dense<0.000000e+00> : vector<8x384xf32>
    %88 = tpu.matmul %87, %85, %cst_83 {dimension_numbers = #tpu.dot_dimension_numbers<[1], [0], [0], [1], [0, 0, 1, 1], [], []>} : vector<8x8xf32>, vector<8x384xf32>, vector<8x384xf32> -> vector<8x384xf32>
    %89 = arith.addf %84, %88 : vector<8x384xf32>
    %c0_84 = arith.constant 0 : index
    %c129 = arith.constant 129 : index
    %90 = vector.load %arg8[%c0_84, %c129] : memref<8x640xf32, #tpu.memory_space<vmem>>, vector<8x384xf32>
    %c5_85 = arith.constant 5 : index
    %c0_86 = arith.constant 0 : index
    %c0_87 = arith.constant 0 : index
    %91 = vector.load %arg4[%c5_85, %c0_86, %c0_87] : memref<9x8x8xf32, #tpu.memory_space<vmem>>, vector<1x8x8xf32>
    %92 = vector.shape_cast %91 : vector<1x8x8xf32> to vector<8x8xf32>
    %cst_88 = arith.constant dense<0.000000e+00> : vector<8x384xf32>
    %93 = tpu.matmul %92, %90, %cst_88 {dimension_numbers = #tpu.dot_dimension_numbers<[1], [0], [0], [1], [0, 0, 1, 1], [], []>} : vector<8x8xf32>, vector<8x384xf32>, vector<8x384xf32> -> vector<8x384xf32>
    %94 = arith.addf %89, %93 : vector<8x384xf32>
    %c0_89 = arith.constant 0 : index
    %c145 = arith.constant 145 : index
    %95 = vector.load %arg8[%c0_89, %c145] : memref<8x640xf32, #tpu.memory_space<vmem>>, vector<8x384xf32>
    %c6_90 = arith.constant 6 : index
    %c0_91 = arith.constant 0 : index
    %c0_92 = arith.constant 0 : index
    %96 = vector.load %arg4[%c6_90, %c0_91, %c0_92] : memref<9x8x8xf32, #tpu.memory_space<vmem>>, vector<1x8x8xf32>
    %97 = vector.shape_cast %96 : vector<1x8x8xf32> to vector<8x8xf32>
    %cst_93 = arith.constant dense<0.000000e+00> : vector<8x384xf32>
    %98 = tpu.matmul %97, %95, %cst_93 {dimension_numbers = #tpu.dot_dimension_numbers<[1], [0], [0], [1], [0, 0, 1, 1], [], []>} : vector<8x8xf32>, vector<8x384xf32>, vector<8x384xf32> -> vector<8x384xf32>
    %99 = arith.addf %94, %98 : vector<8x384xf32>
    %c0_94 = arith.constant 0 : index
    %c146 = arith.constant 146 : index
    %100 = vector.load %arg8[%c0_94, %c146] : memref<8x640xf32, #tpu.memory_space<vmem>>, vector<8x384xf32>
    %c7_95 = arith.constant 7 : index
    %c0_96 = arith.constant 0 : index
    %c0_97 = arith.constant 0 : index
    %101 = vector.load %arg4[%c7_95, %c0_96, %c0_97] : memref<9x8x8xf32, #tpu.memory_space<vmem>>, vector<1x8x8xf32>
    %102 = vector.shape_cast %101 : vector<1x8x8xf32> to vector<8x8xf32>
    %cst_98 = arith.constant dense<0.000000e+00> : vector<8x384xf32>
    %103 = tpu.matmul %102, %100, %cst_98 {dimension_numbers = #tpu.dot_dimension_numbers<[1], [0], [0], [1], [0, 0, 1, 1], [], []>} : vector<8x8xf32>, vector<8x384xf32>, vector<8x384xf32> -> vector<8x384xf32>
    %104 = arith.addf %99, %103 : vector<8x384xf32>
    %c0_99 = arith.constant 0 : index
    %c147 = arith.constant 147 : index
    %105 = vector.load %arg8[%c0_99, %c147] : memref<8x640xf32, #tpu.memory_space<vmem>>, vector<8x384xf32>
    %c8_100 = arith.constant 8 : index
    %c0_101 = arith.constant 0 : index
    %c0_102 = arith.constant 0 : index
    %106 = vector.load %arg4[%c8_100, %c0_101, %c0_102] : memref<9x8x8xf32, #tpu.memory_space<vmem>>, vector<1x8x8xf32>
    %107 = vector.shape_cast %106 : vector<1x8x8xf32> to vector<8x8xf32>
    %cst_103 = arith.constant dense<0.000000e+00> : vector<8x384xf32>
    %108 = tpu.matmul %107, %105, %cst_103 {dimension_numbers = #tpu.dot_dimension_numbers<[1], [0], [0], [1], [0, 0, 1, 1], [], []>} : vector<8x8xf32>, vector<8x384xf32>, vector<8x384xf32> -> vector<8x384xf32>
    %109 = arith.addf %104, %108 : vector<8x384xf32>
    %c0_104 = arith.constant 0 : index
    %c0_105 = arith.constant 0 : index
    %110 = vector.load %arg5[%c0_104, %c0_105] : memref<8x1xf32, #tpu.memory_space<vmem>>, vector<8x1xf32>
    %111 = vector.broadcast %110 : vector<8x1xf32> to vector<8x384xf32>
    %112 = arith.addf %109, %111 : vector<8x384xf32>
    %c0_106 = arith.constant 0 : index
    %c0_107 = arith.constant 0 : index
    %c19_108 = arith.constant 19 : index
    %113 = vector.load %arg1[%c0_106, %c0_107, %c19_108] : memref<1x8x512xf32, #tpu.memory_space<vmem>>, vector<1x8x384xf32>
    %114 = vector.shape_cast %113 : vector<1x8x384xf32> to vector<8x384xf32>
    %115 = arith.addf %112, %114 : vector<8x384xf32>
    %cst_109 = arith.constant 0.000000e+00 : f32
    %116 = vector.broadcast %cst_109 : f32 to vector<8x384xf32>
    %117 = arith.maximumf %115, %116 : vector<8x384xf32>
    %c0_110 = arith.constant 0 : index
    %c0_111 = arith.constant 0 : index
    %c0_112 = arith.constant 0 : index
    %118 = vector.load %arg7[%c0_110, %c0_111, %c0_112] : memref<1x8x384xf32, #tpu.memory_space<vmem>>, vector<1x8x384xf32>
    %119 = vector.shape_cast %118 : vector<1x8x384xf32> to vector<8x384xf32>
    %120 = vector.shape_cast %117 : vector<8x384xf32> to vector<1x8x384xf32>
    tpu.vector_store %arg7[%c0_110, %c0_111, %c0_112], %120 {strides = array<i32>} : memref<1x8x384xf32, #tpu.memory_space<vmem>>, vector<1x8x384xf32>,
    return
  }
  func.func @transform_0(%arg0: i32) -> (i32, i32, i32) {
    %c0_i32 = arith.constant 0 : i32
    %c0_i32_0 = arith.constant 0 : i32
    %c0_i32_1 = arith.constant 0 : i32
    return %arg0, %c0_i32, %c0_i32_0 : i32, i32, i32
  }
  func.func @transform_1(%arg0: i32) -> (i32, i32, i32) {
    %c0_i32 = arith.constant 0 : i32
    %c0_i32_0 = arith.constant 0 : i32
    %c0_i32_1 = arith.constant 0 : i32
    %c0_i32_2 = arith.constant 0 : i32
    return %c0_i32, %c0_i32_0, %c0_i32_1 : i32, i32, i32
  }
  func.func @transform_2(%arg0: i32) -> (i32, i32) {
    %c0_i32 = arith.constant 0 : i32
    %c0_i32_0 = arith.constant 0 : i32
    %c0_i32_1 = arith.constant 0 : i32
    return %c0_i32, %c0_i32_0 : i32, i32
  }
  func.func @transform_3(%arg0: i32) -> (i32, i32, i32) {
    %c0_i32 = arith.constant 0 : i32
    %c0_i32_0 = arith.constant 0 : i32
    %c0_i32_1 = arith.constant 0 : i32
    %c0_i32_2 = arith.constant 0 : i32
    return %c0_i32, %c0_i32_0, %c0_i32_1 : i32, i32, i32
  }
  func.func @transform_4(%arg0: i32) -> (i32, i32) {
    %c0_i32 = arith.constant 0 : i32
    %c0_i32_0 = arith.constant 0 : i32
    %c0_i32_1 = arith.constant 0 : i32
    return %c0_i32, %c0_i32_0 : i32, i32
  }
  func.func @transform_5(%arg0: i32) -> (i32, i32) {
    %c0_i32 = arith.constant 0 : i32
    %c0_i32_0 = arith.constant 0 : i32
    %c0_i32_1 = arith.constant 0 : i32
    return %c0_i32, %c0_i32_0 : i32, i32
  }
  func.func @transform_6(%arg0: i32) -> (i32, i32, i32) {
    %c0_i32 = arith.constant 0 : i32
    %c0_i32_0 = arith.constant 0 : i32
    %c0_i32_1 = arith.constant 0 : i32
    return %arg0, %c0_i32, %c0_i32_0 : i32, i32, i32
  }
}

</mosaic_0001>

<bundles_post_ra>
// kernel: tpu_custom_call.1
= control target key start
LH: loop header
LB: loop body
LE: loop exit
PB: predicated region body
PF: predicated region fallthrough
CT: control target
= control target key end

     0   :  { %s3300_s25 = smov 127   ;;  %v3301_v3 = vmov 0.0   ;;  %s3754_s0 = inlined_call_operand.vmem [shape: f32[1,8,512], index: 0, kind: input, shape index: {}]   ;;  %s3755_s1 = inlined_call_operand.vmem [shape: f32[9,8,8], index: 1, kind: input, shape index: {}]   ;;  %s3756_s2 = inlined_call_operand.vmem [shape: f32[8,1], index: 2, kind: input, shape index: {}]   ;;  %s3757_s3 = inlined_call_operand.vmem [shape: f32[9,8,8], index: 3, kind: input, shape index: {}]   ;;  %s3758_s4 = inlined_call_operand.vmem [shape: f32[8,1], index: 4, kind: input, shape index: {}]   ;;  %s3759_s5 = inlined_call_operand.vmem [shape: f32[1,384], index: 5, kind: input, shape index: {}]   ;;  %s3760_s6 = inlined_call_operand.hbm [shape: f32[1,8,384], index: 6, kind: output, shape index: {}]  }
   0x1   :  { %v3355_v0 = vld [vmem:[%s3754_s0 + $0x8] sm:$0xff]  ;;  %v3360_v1 = vld [vmem:[%s3754_s0] sm:$0xff]  ;;  %v3369_v2 = vld [vmem:[%s3754_s0 + $0x10] sm:$0xff]  ;;  %121 = vmatprep.mubr.f32.mxu0 %v3301_v3  ;;  %3136 = vmatprep.subr.mxu1 %v3301_v3 }
   0x2   :  { %40 = vrot.lane.b32.xlu0 %v3355_v0, %s3300_s25  ;;  %38 = vrot.lane.b32.xlu1 %v3360_v1, %s3300_s25 }
   0x3   :  { %11 = vsyncpa [#allocation4], 0  ;;  %s3302_s28 = smov 126   ;;  %s3303_s29 = smov 110   ;;  %vm3307_vm0 = vmmov 0   ;;  %v3406_v4 = vld [vmem:[%s3754_s0 + $0x18] sm:$0xff] }
   0x4   :  { %s3304_s30 = smov 109   ;;  %s3305_s7 = smov 108   ;;  %3138 = vmatprep.mubr.msk.f32.mxu1 %vm3307_vm0, %v3301_v3  ;;  %v1490_v5 = vld [vmem:[%s3756_s2] sm:$0xff]  ;;  %v3310_v6 = vmov 0   ;;  %vm46_vm1 = vcmask 1039360   ;;  %v3434_v12 = vld [vmem:[%s3755_s1 + $0x8] sm:$0xff] }
   0x5   :  { %s3306_s8 = smov 92   ;;  %s3308_s9 = smov 91   ;;  %3275 = vset.pattern.permute.xlu0 %v3310_v6  ;;  %vm53_vm2 = vcmask 64512   ;;  %vm352_vm3 = vcmask 1031168   ;;  %vm516_vm4 = vcmask 900096   ;;  %v27_v19 = vld [vmem:[%s3755_s1] sm:$0xff] }
   0x6   :  { %42 = vrot.lane.b32.xlu0 %v3369_v2, %s3300_s25  ;;  %346 = vrot.lane.b32.xlu1 %v3355_v0, %s3302_s28  ;;  %s3309_s12 = smov 90   ;;  %vm680_vm5 = vcmask 891904   ;;  %v3053_v26 = vld [vmem:[%s3755_s1 + $0x10] sm:$0xff]  ;;  %vm844_vm6 = vcmask 883712   ;;  %v3056_v33 = vld [vmem:[%s3755_s1 + $0x18] sm:$0xff]  ;;  %vm1008_vm7 = vcmask 752640  }
   0x7   :  { %v3059_v40 = vld [vmem:[%s3755_s1 + $0x20] sm:$0xff]  ;;  %vm1172_vm8 = vcmask 744448   ;;  %v3062_v48 = vld [vmem:[%s3755_s1 + $0x28] sm:$0xff]  ;;  %vm1336_vm9 = vcmask 736256   ;;  %v3065_v57 = vld [vmem:[%s3755_s1 + $0x30] sm:$0xff]  ;;  %s3311_s10 = smov 18  }
   0x8   :  { %s3314_s0 = smov 1   ;;  %s3315_s13 = smov 111   ;;  %vm1546_vm10 = vcmask 146432   ;;  %vm1705_vm11 = vcmask 154624   ;;  %vm1866_vm12 = vcmask 138240   ;;  %vm2030_vm13 = vcmask 7168  }
   0x9   :  { %vm2514_vm14 = vcmask 908288  }
   0xa   :  { %348 = vrot.lane.b32.xlu0 %v3369_v2, %s3302_s28  ;;  %344 = vrot.lane.b32.xlu1 %v3360_v1, %s3302_s28 }
   0xe   :  { %510 = vrot.lane.b32.xlu0 %v3355_v0, %s3303_s29  ;;  %512 = vrot.lane.b32.xlu1 %v3369_v2, %s3303_s29 }
  0x12   :  { %508 = vrot.lane.b32.xlu0 %v3360_v1, %s3303_s29  ;;  %674 = vrot.lane.b32.xlu1 %v3355_v0, %s3304_s30 }
  0x16   :  { %676 = vrot.lane.b32.xlu0 %v3369_v2, %s3304_s30  ;;  %672 = vrot.lane.b32.xlu1 %v3360_v1, %s3304_s30 }
  0x1a   :  { %838 = vrot.lane.b32.xlu0 %v3355_v0, %s3305_s7  ;;  %840 = vrot.lane.b32.xlu1 %v3369_v2, %s3305_s7 }
  0x1e   :  { %836 = vrot.lane.b32.xlu0 %v3360_v1, %s3305_s7  ;;  %1002 = vrot.lane.b32.xlu1 %v3355_v0, %s3306_s8 }
  0x22   :  { %1004 = vrot.lane.b32.xlu0 %v3369_v2, %s3306_s8  ;;  %1000 = vrot.lane.b32.xlu1 %v3360_v1, %s3306_s8 }
  0x26   :  { %1166 = vrot.lane.b32.xlu0 %v3355_v0, %s3308_s9  ;;  %1168 = vrot.lane.b32.xlu1 %v3369_v2, %s3308_s9 }
  0x2a   :  { %1164 = vrot.lane.b32.xlu0 %v3360_v1, %s3308_s9  ;;  %44 = vrot.lane.b32.xlu1 %v3406_v4, %s3300_s25 }
  0x2e   :  { %1330 = vrot.lane.b32.xlu0 %v3355_v0, %s3309_s12  ;;  %1332 = vrot.lane.b32.xlu1 %v3369_v2, %s3309_s12 }
  0x32   :  { %1328 = vrot.lane.b32.xlu0 %v3360_v1, %s3309_s12  ;;  %350 = vrot.lane.b32.xlu1 %v3406_v4, %s3302_s28 }
  0x36   :  { %514 = vrot.lane.b32.xlu0 %v3406_v4, %s3303_s29  ;;  %678 = vrot.lane.b32.xlu1 %v3406_v4, %s3304_s30 }
  0x3a   :  { %842 = vrot.lane.b32.xlu0 %v3406_v4, %s3305_s7  ;;  %1006 = vrot.lane.b32.xlu1 %v3406_v4, %s3306_s8 }
  0x3e   :  { %1170 = vrot.lane.b32.xlu0 %v3406_v4, %s3308_s9  ;;  %1334 = vrot.lane.b32.xlu1 %v3406_v4, %s3309_s12  ;;  %s3313_s12 = smov 17  }
  0x42   :  { %1493 = vperm.xlu0 %3275, %v1490_v5   ;;  %v3068_v5 = vld [vmem:[%s3755_s1 + $0x38] sm:$0xff] }
  0x46   :  { %1538 = vrot.lane.b32.xlu0 %v3301_v3, %s3311_s10 }
  0x74   :  { %v41_v7 = vpop.permute.xlu0 %40  ;;  %v39_v8 = vpop.permute.xlu1 %38 }
  0x75   :  { %v47_v13 = vsel %vm46_vm1, %v39_v8, %v41_v7 }
  0x78   :  { %v3427_v9 = vpop.permute.xlu0 %42  ;;  %v347_v10 = vpop.permute.xlu1 %346 }
  0x79   :  { %v48_v11 = vsel %vm46_vm1, %v41_v7, %v3427_v9 }
  0x7a   :  { %57 = vmatprep.subr.mxu0 %v48_v11 }
  0x7b   :  { %58 = vmatpush1.msra.mxu0 %v47_v13 }
  0x7c   :  { %v3437_v14 = vpop.permute.xlu0 %348  ;;  %3049 = vmatmul.mubr.msk.f32.vlgmr.msra.gmra.mrb[0].mxu0 %vm53_vm2, %v3434_v12  ;;  %v345_v15 = vpop.permute.xlu1 %344  ;;  %201 = vmatprep.subr.mxu0 %v3355_v0 }
  0x7d   :  { %202 = vmatpush1.msra.mxu0 %v3360_v1  ;;  %265 = vmatprep.mubr.f32.mxu0 %v3301_v3  ;;  %v354_v16 = vsel %vm352_vm3, %v347_v10, %v3437_v14  ;;  %v353_v20 = vsel %vm352_vm3, %v345_v15, %v347_v10 }
  0x7e   :  { %362 = vmatprep.subr.mxu0 %v354_v16 }
  0x80   :  { %v511_v17 = vpop.permute.xlu0 %510  ;;  %v3446_v18 = vpop.permute.xlu1 %512 }
  0x81   :  { %v518_v21 = vsel %vm516_vm4, %v511_v17, %v3446_v18 }
  0x84   :  { %v509_v22 = vpop.permute.xlu0 %508  ;;  %v675_v23 = vpop.permute.xlu1 %674  ;;  %3051 = vmatmul.mubr.msk.f32.vlgmr.msra.gmra.mrb[0].mxu0 %vm53_vm2, %v27_v19 }
  0x85   :  { %363 = vmatpush1.msra.mxu0 %v353_v20  ;;  %426 = vmatprep.mubr.f32.mxu0 %v3301_v3  ;;  %v517_v27 = vsel %vm516_vm4, %v509_v22, %v511_v17 }
  0x86   :  { %526 = vmatprep.subr.mxu0 %v518_v21 }
  0x88   :  { %v3456_v24 = vpop.permute.xlu0 %676  ;;  %v673_v25 = vpop.permute.xlu1 %672 }
  0x89   :  { %v682_v28 = vsel %vm680_vm5, %v675_v23, %v3456_v24  ;;  %v681_v34 = vsel %vm680_vm5, %v673_v25, %v675_v23 }
  0x8c   :  { %v839_v29 = vpop.permute.xlu0 %838  ;;  %v3464_v30 = vpop.permute.xlu1 %840  ;;  %3054 = vmatmul.mubr.msk.f32.vlgmr.msra.gmra.mrb[0].mxu0 %vm53_vm2, %v3053_v26 }
  0x8d   :  { %527 = vmatpush1.msra.mxu0 %v517_v27  ;;  %590 = vmatprep.mubr.f32.mxu0 %v3301_v3  ;;  %v846_v35 = vsel %vm844_vm6, %v839_v29, %v3464_v30  ;;  %v1504_v27 = vlaneseq }
  0x8e   :  { %690 = vmatprep.subr.mxu0 %v682_v28 }
  0x90   :  { %v837_v31 = vpop.permute.xlu0 %836  ;;  %v1003_v32 = vpop.permute.xlu1 %1002 }
  0x91   :  { %v845_v41 = vsel %vm844_vm6, %v837_v31, %v839_v29  ;;  %v1505_v31 = vshrl.u32 %v1504_v27, 7 }
  0x94   :  { %v3474_v36 = vpop.permute.xlu0 %1004  ;;  %v1001_v37 = vpop.permute.xlu1 %1000  ;;  %3057 = vmatmul.mubr.msk.f32.vlgmr.msra.gmra.mrb[0].mxu0 %vm53_vm2, %v3056_v33 }
  0x95   :  { %691 = vmatpush1.msra.mxu0 %v681_v34  ;;  %754 = vmatprep.mubr.f32.mxu0 %v3301_v3  ;;  %v1010_v42 = vsel %vm1008_vm7, %v1003_v32, %v3474_v36  ;;  %v1009_v49 = vsel %vm1008_vm7, %v1001_v37, %v1003_v32  ;;  %v1502_v37 = vld [vmem:[%s3759_s5] sm:$0x7]  ;;  %s3312_s5 = smov 19  }
  0x96   :  { %854 = vmatprep.subr.mxu0 %v846_v35  ;;  %v1506_v35 = vsub.s32 0, %v1505_v31 }
  0x98   :  { %v1167_v38 = vpop.permute.xlu0 %1166  ;;  %v3478_v39 = vpop.permute.xlu1 %1168 }
  0x99   :  { %v1174_v50 = vsel %vm1172_vm8, %v1167_v38, %v3478_v39 }
  0x9c   :  { %v1165_v43 = vpop.permute.xlu0 %1164  ;;  %v45_v44 = vpop.permute.xlu1 %44  ;;  %3060 = vmatmul.mubr.msk.f32.vlgmr.msra.gmra.mrb[0].mxu0 %vm53_vm2, %v3059_v40 }
  0x9d   :  { %v49_v45 = vsel %vm46_vm1, %v3427_v9, %v45_v44  ;;  %855 = vmatpush1.msra.mxu0 %v845_v41  ;;  %918 = vmatprep.mubr.f32.mxu0 %v3301_v3  ;;  %v1173_v58 = vsel %vm1172_vm8, %v1165_v43, %v1167_v38  ;;  %v1510_v38 = vsub.s32 1, %v1505_v31  ;;  %v1507_v44 = vrot.slane %v1502_v37, %v1506_v35 }
  0x9e   :  { %3137 = vmatpush3.msra.mxu1 %v49_v45  ;;  %1018 = vmatprep.subr.mxu0 %v1010_v42 }
  0x9f   :  { %3139 = vmatmul.mubr.msk.f32.vlgmr.msra.gmra.mrb[0].mxu1 %vm53_vm2, %v3434_v12  ;;  %3141 = vmatprep.subr.mxu1 %v3301_v3  ;;  %v3071_v12 = vld [vmem:[%s3755_s1 + $0x40] sm:$0xff] }
  0xa0   :  { %v1331_v46 = vpop.permute.xlu0 %1330  ;;  %v1333_v47 = vpop.permute.xlu1 %1332  ;;  %3142 = vmatpush3.msra.mxu1 %v3369_v2  ;;  %3143 = vmatprep.mubr.msk.f32.mxu1 %vm3307_vm0, %v3301_v3 }
  0xa1   :  { %3146 = vmatprep.subr.mxu1 %v3301_v3  ;;  %v1338_v61 = vsel %vm1336_vm9, %v1331_v46, %v1333_v47 }
  0xa3   :  { %3144 = vmatmul.mubr.msk.f32.vlgmr.msra.gmra.mrb[2].mxu1 %vm53_vm2, %v27_v19 }
  0xa4   :  { %v1329_v51 = vpop.permute.xlu0 %1328  ;;  %v351_v52 = vpop.permute.xlu1 %350  ;;  %3063 = vmatmul.mubr.msk.f32.vlgmr.msra.gmra.mrb[0].mxu0 %vm53_vm2, %v3062_v48  ;;  %3148 = vmatprep.mubr.msk.f32.mxu1 %vm3307_vm0, %v3301_v3 }
  0xa5   :  { %v355_v53 = vsel %vm352_vm3, %v3437_v14, %v351_v52  ;;  %1019 = vmatpush1.msra.mxu0 %v1009_v49  ;;  %1082 = vmatprep.mubr.f32.mxu0 %v3301_v3  ;;  %v1337_v6 = vsel %vm1336_vm9, %v1329_v51, %v1331_v46 }
  0xa6   :  { %3147 = vmatpush3.msra.mxu1 %v355_v53  ;;  %1182 = vmatprep.subr.mxu0 %v1174_v50 }
  0xa7   :  { %3149 = vmatmul.mubr.msk.f32.vlgmr.msra.gmra.mrb[4].mxu1 %vm53_vm2, %v3053_v26  ;;  %3151 = vmatprep.subr.mxu1 %v3301_v3 }
  0xa8   :  { %v515_v54 = vpop.permute.xlu0 %514  ;;  %v679_v55 = vpop.permute.xlu1 %678  ;;  %3153 = vmatprep.mubr.msk.f32.mxu1 %vm3307_vm0, %v3301_v3 }
  0xa9   :  { %v519_v56 = vsel %vm516_vm4, %v3446_v18, %v515_v54  ;;  %v683_v59 = vsel %vm680_vm5, %v3456_v24, %v679_v55 }
  0xaa   :  { %3152 = vmatpush3.msra.mxu1 %v519_v56  ;;  %v1514_v56 = vsub.s32 2, %v1505_v31 }
  0xab   :  { %3154 = vmatmul.mubr.msk.f32.vlgmr.msra.gmra.mrb[6].mxu1 %vm53_vm2, %v3056_v33  ;;  %3156 = vmatprep.subr.mxu1 %v3301_v3 }
  0xac   :  { %v843_v60 = vpop.permute.xlu0 %842  ;;  %3157 = vmatpush3.msra.mxu1 %v683_v59  ;;  %3066 = vmatmul.mubr.msk.f32.vlgmr.msra.gmra.mrb[0].mxu0 %vm53_vm2, %v3065_v57  ;;  %v1007_v63 = vpop.permute.xlu1 %1006 }
  0xad   :  { %v847_v62 = vsel %vm844_vm6, %v3464_v30, %v843_v60  ;;  %3158 = vmatprep.mubr.msk.f32.mxu1 %vm3307_vm0, %v3301_v3  ;;  %3161 = vmatprep.subr.mxu1 %v3301_v3  ;;  %v1011_v7 = vsel %vm1008_vm7, %v3474_v36, %v1007_v63  ;;  %v2994_v60 = vld [vmem:[%s3758_s4] sm:$0xff] }
  0xae   :  { %1183 = vmatpush1.msra.mxu0 %v1173_v58  ;;  %1246 = vmatprep.mubr.f32.mxu0 %v3301_v3  ;;  %v1515_v58 = vrot.slane %v1502_v37, %v1514_v56 }
  0xaf   :  { %3159 = vmatmul.mubr.msk.f32.vlgmr.msra.gmra.mrb[8].mxu1 %vm53_vm2, %v3059_v40  ;;  %1346 = vmatprep.subr.mxu0 %v1338_v61 }
  0xb0   :  { %3162 = vmatpush3.msra.mxu1 %v847_v62  ;;  %3163 = vmatprep.mubr.msk.f32.mxu1 %vm3307_vm0, %v3301_v3  ;;  %v1171_v8 = vpop.permute.xlu0 %1170  ;;  %v1335_v9 = vpop.permute.xlu1 %1334 }
  0xb1   :  { %3166 = vmatprep.subr.mxu1 %v3301_v3  ;;  %v1175_v10 = vsel %vm1172_vm8, %v3478_v39, %v1171_v8  ;;  %v1339_v11 = vsel %vm1336_vm9, %v1333_v47, %v1335_v9  ;;  %v1511_v47 = vrot.slane %v1502_v37, %v1510_v38 }
  0xb3   :  { %3164 = vmatmul.mubr.msk.f32.vlgmr.msra.gmra.mrb[10].mxu1 %vm53_vm2, %v3062_v48 }
  0xb4   :  { %3167 = vmatpush3.msra.mxu1 %v1011_v7  ;;  %3069 = vmatmul.mubr.msk.f32.vlgmr.msra.gmra.mrb[0].mxu0 %vm53_vm2, %v3068_v5  ;;  %v3074_v7 = vld [vmem:[%s3757_s3 + $0x8] sm:$0xff] }
  0xb5   :  { %3168 = vmatprep.mubr.msk.f32.mxu1 %vm3307_vm0, %v3301_v3  ;;  %3171 = vmatprep.subr.mxu1 %v3301_v3 }
  0xb6   :  { %1347 = vmatpush1.msra.mxu0 %v1337_v6  ;;  %1410 = vmatprep.mubr.f32.mxu0 %v3301_v3 }
  0xb7   :  { %3169 = vmatmul.mubr.msk.f32.vlgmr.msra.gmra.mrb[12].mxu1 %vm53_vm2, %v3065_v57 }
  0xb8   :  { %3172 = vmatpush3.msra.mxu1 %v1175_v10  ;;  %3173 = vmatprep.mubr.msk.f32.mxu1 %vm3307_vm0, %v3301_v3 }
  0xb9   :  { %3176 = vmatprep.subr.mxu1 %v3301_v3 }
  0xbb   :  { %3174 = vmatmul.mubr.msk.f32.vlgmr.msra.gmra.mrb[14].mxu1 %vm53_vm2, %v3068_v5 }
  0xbc   :  { %3177 = vmatpush3.msra.mxu1 %v1339_v11  ;;  %3072 = vmatmul.mubr.msk.f32.vlgmr.msra.gmra.mrb[0].mxu0 %vm53_vm2, %v3071_v12 }
  0xbd   :  { %3178 = vmatprep.mubr.msk.f32.mxu1 %vm3307_vm0, %v3301_v3  ;;  %1620 = vmatprep.mubr.f32.mxu0 %v3301_v3 }
  0xbe   :  { %3181 = vmatprep.subr.mxu1 %v3301_v3 }
  0xbf   :  { %3179 = vmatmul.mubr.msk.f32.vlgmr.msra.gmra.mrb[16].mxu1 %vm53_vm2, %v3071_v12  ;;  %v1531_v12 = vld [vmem:[%s3757_s3] sm:$0xff] }
  0xc0   :  { %3183 = vmatprep.mubr.msk.f32.mxu1 %vm3307_vm0, %v3301_v3 }
  0xc1   :  { %v1494_v36 = vpop.permute.xlu0 %1493 }
  0xc5   :  { %v1539_v61 = vpop.permute.xlu0 %1538 }
 0x172   :  { %v194_v13 = vpop.f32.mrb[0].mxu1 }
 0x173   :  { %v3140_v14 = vpop.f32.mrb[1].mxu1 }
 0x176   :  { %v338_v15 = vpop.f32.mrb[2].mxu1 }
 0x177   :  { %v339_v16 = vadd.f32 %v338_v15, %v194_v13  ;;  %v3145_v17 = vpop.f32.mrb[3].mxu1 }
 0x17a   :  { %v499_v18 = vpop.f32.mrb[4].mxu1 }
 0x17b   :  { %v505_v19 = vadd.f32 %v499_v18, %v339_v16  ;;  %v3150_v20 = vpop.f32.mrb[5].mxu1 }
 0x17e   :  { %v663_v21 = vpop.f32.mrb[6].mxu1 }
 0x17f   :  { %v669_v22 = vadd.f32 %v663_v21, %v505_v19  ;;  %v3155_v23 = vpop.f32.mrb[7].mxu1  ;;  %v3079_v21 = vld [vmem:[%s3757_s3 + $0x10] sm:$0xff] }
 0x182   :  { %v827_v24 = vpop.f32.mrb[8].mxu1 }
 0x183   :  { %v833_v25 = vadd.f32 %v827_v24, %v669_v22  ;;  %v3160_v26 = vpop.f32.mrb[9].mxu1 }
 0x186   :  { %v991_v28 = vpop.f32.mrb[10].mxu1 }
 0x187   :  { %v997_v29 = vadd.f32 %v991_v28, %v833_v25  ;;  %v3165_v30 = vpop.f32.mrb[11].mxu1  ;;  %v3082_v28 = vld [vmem:[%s3757_s3 + $0x18] sm:$0xff] }
 0x18a   :  { %v1155_v32 = vpop.f32.mrb[12].mxu1 }
 0x18b   :  { %v1161_v33 = vadd.f32 %v1155_v32, %v997_v29  ;;  %v3170_v34 = vpop.f32.mrb[13].mxu1 }
 0x18e   :  { %v1319_v39 = vpop.f32.mrb[14].mxu1 }
 0x18f   :  { %v1412_v40 = vpop.f32.mrb[0].mxu0  ;;  %v1325_v41 = vadd.f32 %v1319_v39, %v1161_v33  ;;  %v3175_v42 = vpop.f32.mrb[15].mxu1 }
 0x190   :  { %v1496_v43 = vadd.f32 %v1494_v36, %v1412_v40  ;;  %v1414_v45 = vpop.f32.mrb[1].mxu0  ;;  %v3088_v42 = vld [vmem:[%s3757_s3 + $0x28] sm:$0xff] }
 0x191   :  { %v1497_v46 = vadd.f32 %v1494_v36, %v1414_v45 }
 0x192   :  { %v1499_v48 = vmax.f32 %v1496_v43, 0.0  ;;  %v1483_v49 = vpop.f32.mrb[16].mxu1 }
 0x193   :  { %v1500_v50 = vmax.f32 %v1497_v46, 0.0  ;;  %v1489_v51 = vadd.f32 %v1483_v49, %v1325_v41  ;;  %v3180_v52 = vpop.f32.mrb[17].mxu1 }
 0x194   :  { %v3572_v53 = vmul.f32 %v1507_v44, %v1499_v48 }
 0x195   :  { %v3574_v54 = vmul.f32 %v1511_v47, %v1500_v50  ;;  %v1498_v55 = vadd.f32 %v1494_v36, %v1489_v51  ;;  %v3085_v36 = vld [vmem:[%s3757_s3 + $0x20] sm:$0xff]  ;;  %v3091_v47 = vld [vmem:[%s3757_s3 + $0x30] sm:$0xff] }
 0x196   :  { %1540 = vrot.lane.b32.xlu1 %v3572_v53, %s3311_s10 }
 0x197   :  { %1701 = vrot.lane.b32.xlu0 %v3574_v54, %s3312_s5  ;;  %v1501_v57 = vmax.f32 %v1498_v55, 0.0 }
 0x199   :  { %v3586_v59 = vmul.f32 %v1515_v58, %v1501_v57  ;;  %v3097_v58 = vld [vmem:[%s3757_s3 + $0x40] sm:$0xff] }
 0x19a   :  { %1542 = vrot.lane.b32.xlu1 %v3574_v54, %s3311_s10 }
 0x19b   :  { %1860 = vrot.lane.b32.xlu0 %v3572_v53, %s3313_s12 }
 0x19e   :  { %1699 = vrot.lane.b32.xlu1 %v3572_v53, %s3312_s5 }
 0x19f   :  { %1858 = vrot.lane.b32.xlu0 %v3301_v3, %s3313_s12 }
 0x1a2   :  { %1697 = vrot.lane.b32.xlu1 %v3301_v3, %s3312_s5 }
 0x1a3   :  { %2026 = vrot.lane.b32.xlu0 %v3574_v54, %s3314_s0 }
 0x1a6   :  { %1862 = vrot.lane.b32.xlu1 %v3574_v54, %s3313_s12 }
 0x1a7   :  { %1544 = vrot.lane.b32.xlu0 %v3586_v59, %s3311_s10 }
 0x1aa   :  { %2024 = vrot.lane.b32.xlu1 %v3572_v53, %s3314_s0 }
 0x1ab   :  { %1864 = vrot.lane.b32.xlu0 %v3586_v59, %s3313_s12 }
 0x1ae   :  { %2022 = vrot.lane.b32.xlu1 %v3301_v3, %s3314_s0 }
 0x1af   :  { %2347 = vrot.lane.b32.xlu0 %v3586_v59, %s3300_s25 }
 0x1b2   :  { %1703 = vrot.lane.b32.xlu1 %v3586_v59, %s3312_s5 }
 0x1b3   :  { %2028 = vrot.lane.b32.xlu0 %v3586_v59, %s3314_s0 }
 0x1b6   :  { %2343 = vrot.lane.b32.xlu1 %v3572_v53, %s3300_s25 }
 0x1b7   :  { %2510 = vrot.lane.b32.xlu0 %v3586_v59, %s3315_s13 }
 0x1ba   :  { %2345 = vrot.lane.b32.xlu1 %v3574_v54, %s3300_s25 }
 0x1bb   :  { %2349 = vrot.lane.b32.xlu0 %v3301_v3, %s3300_s25 }
 0x1be   :  { %2506 = vrot.lane.b32.xlu1 %v3572_v53, %s3315_s13 }
 0x1bf   :  { %2670 = vrot.lane.b32.xlu0 %v3572_v53, %s3303_s29 }
 0x1c2   :  { %2508 = vrot.lane.b32.xlu1 %v3574_v54, %s3315_s13 }
 0x1c3   :  { %2672 = vrot.lane.b32.xlu0 %v3574_v54, %s3303_s29 }
 0x1c6   :  { %2512 = vrot.lane.b32.xlu1 %v3301_v3, %s3315_s13 }
 0x1c7   :  { %2835 = vrot.lane.b32.xlu0 %v3574_v54, %s3304_s30 }
 0x1ca   :  { %2674 = vrot.lane.b32.xlu1 %v3586_v59, %s3303_s29 }
 0x1cb   :  { %2839 = vrot.lane.b32.xlu0 %v3301_v3, %s3304_s30 }
 0x1ce   :  { %2676 = vrot.lane.b32.xlu1 %v3301_v3, %s3303_s29 }
 0x1cf   :  { %2997 = vperm.xlu0 %3275, %v2994_v60  }
 0x1d2   :  { %2837 = vrot.lane.b32.xlu1 %v3586_v59, %s3304_s30 }
 0x1d3   :  { %3013 = vrot.lane.b32.xlu0 %v3355_v0, %s3304_s30 }
 0x1d6   :  { %2833 = vrot.lane.b32.xlu1 %v3572_v53, %s3304_s30 }
 0x1d7   :  { %3017 = vrot.lane.b32.xlu0 %v3406_v4, %s3304_s30 }
 0x1da   :  { %3011 = vrot.lane.b32.xlu1 %v3360_v1, %s3304_s30 }
 0x1de   :  { %3015 = vrot.lane.b32.xlu1 %v3369_v2, %s3304_s30 }
 0x208   :  { %v1541_v62 = vpop.permute.xlu1 %1540 }
 0x209   :  { %v1702_v63 = vpop.permute.xlu0 %1701  ;;  %v1547_v4 = vsel %vm1546_vm10, %v1539_v61, %v1541_v62 }
 0x20c   :  { %v1543_v5 = vpop.permute.xlu1 %1542 }
 0x20d   :  { %v1861_v6 = vpop.permute.xlu0 %1860  ;;  %v1548_v0 = vsel %vm1546_vm10, %v1541_v62, %v1543_v5 }
 0x20e   :  { %1556 = vmatprep.subr.mxu0 %v1548_v0 }
 0x20f   :  { %1557 = vmatpush1.msra.mxu0 %v1547_v4 }
 0x210   :  { %3075 = vmatmul.mubr.msk.f32.vlgmr.msra.gmra.mrb[2].mxu0 %vm53_vm2, %v3074_v7  ;;  %v1700_v1 = vpop.permute.xlu1 %1699 }
 0x211   :  { %v1859_v2 = vpop.permute.xlu0 %1858  ;;  %v1707_v8 = vsel %vm1705_vm11, %v1700_v1, %v1702_v63  ;;  %1779 = vmatprep.mubr.f32.mxu0 %v3301_v3 }
 0x212   :  { %1715 = vmatprep.subr.mxu0 %v1707_v8  ;;  %v1867_v16 = vsel %vm1866_vm12, %v1859_v2, %v1861_v6 }
 0x214   :  { %v1698_v9 = vpop.permute.xlu1 %1697 }
 0x215   :  { %v1706_v10 = vsel %vm1705_vm11, %v1698_v9, %v1700_v1  ;;  %v2027_v11 = vpop.permute.xlu0 %2026 }
 0x216   :  { %1716 = vmatpush1.msra.mxu0 %v1706_v10 }
 0x218   :  { %3077 = vmatmul.mubr.msk.f32.vlgmr.msra.gmra.mrb[2].mxu0 %vm53_vm2, %v1531_v12  ;;  %v1863_v13 = vpop.permute.xlu1 %1862 }
 0x219   :  { %v1545_v14 = vpop.permute.xlu0 %1544  ;;  %v1868_v15 = vsel %vm1866_vm12, %v1861_v6, %v1863_v13  ;;  %1940 = vmatprep.mubr.f32.mxu0 %v3301_v3 }
 0x21a   :  { %v1549_v17 = vsel %vm1546_vm10, %v1543_v5, %v1545_v14  ;;  %1876 = vmatprep.subr.mxu0 %v1868_v15 }
 0x21b   :  { %3182 = vmatpush3.msra.mxu1 %v1549_v17  ;;  %1877 = vmatpush1.msra.mxu0 %v1867_v16 }
 0x21c   :  { %v2025_v18 = vpop.permute.xlu1 %2024  ;;  %3184 = vmatmul.mubr.msk.f32.vlgmr.msra.gmra.mrb[18].mxu1 %vm53_vm2, %v3074_v7  ;;  %3186 = vmatprep.subr.mxu1 %v3301_v3 }
 0x21d   :  { %v1865_v19 = vpop.permute.xlu0 %1864  ;;  %v2032_v20 = vsel %vm2030_vm13, %v2025_v18, %v2027_v11  ;;  %3188 = vmatprep.mubr.msk.f32.mxu1 %vm3307_vm0, %v3301_v3 }
 0x21e   :  { %2040 = vmatprep.subr.mxu0 %v2032_v20  ;;  %v1869_v29 = vsel %vm1866_vm12, %v1863_v13, %v1865_v19 }
 0x220   :  { %3080 = vmatmul.mubr.msk.f32.vlgmr.msra.gmra.mrb[2].mxu0 %vm53_vm2, %v3079_v21  ;;  %v2023_v22 = vpop.permute.xlu1 %2022 }
 0x221   :  { %v2031_v23 = vsel %vm2030_vm13, %v2023_v22, %v2025_v18  ;;  %v2348_v24 = vpop.permute.xlu0 %2347  ;;  %2104 = vmatprep.mubr.f32.mxu0 %v3301_v3 }
 0x222   :  { %2041 = vmatpush1.msra.mxu0 %v2031_v23 }
 0x223   :  { %2189 = vmatprep.subr.mxu0 %v3574_v54  ;;  %v3094_v54 = vld [vmem:[%s3757_s3 + $0x38] sm:$0xff]  ;;  %s3316_s3 = smov [#allocation3]  }
 0x224   :  { %v1704_v25 = vpop.permute.xlu1 %1703  ;;  %s3040_s8 = sshll.u32 %s3316_s3, 4  ;;  %s3041_s8 = int_to_ptr.vmem [resolvable:$true] %s3040_s8 }
 0x225   :  { %v1708_v26 = vsel %vm1705_vm11, %v1702_v63, %v1704_v25  ;;  %v2029_v27 = vpop.permute.xlu0 %2028  ;;  %s3276_s9 = scalar_lea.vmem %s3041_s8, 384  ;;  %p3281_p1 = scmp.lt.s32.totalorder %s3041_s8, %s3041_s8 }
 0x226   :  { %3187 = vmatpush3.msra.mxu1 %v1708_v26  ;;  %v2033_v32 = vsel %vm2030_vm13, %v2027_v11, %v2029_v27  ;;  %p3277_p0 = scmp.ne.s32.totalorder %s3041_s8, %s3276_s9  ;;  %p3282_p2 = scmp.lt.s32.totalorder %s3276_s9, %s3276_s9 }
 0x227   :  { %3189 = vmatmul.mubr.msk.f32.vlgmr.msra.gmra.mrb[20].mxu1 %vm53_vm2, %v1531_v12  ;;  %3191 = vmatprep.subr.mxu1 %v3301_v3 }
 0x228   :  { %3192 = vmatpush3.msra.mxu1 %v1869_v29  ;;  %3083 = vmatmul.mubr.msk.f32.vlgmr.msra.gmra.mrb[2].mxu0 %vm53_vm2, %v3082_v28  ;;  %v2344_v30 = vpop.permute.xlu1 %2343  ;;  %p3283_p3 = por %p3282_p2, %p3281_p1 }
 0x229   :  { %2190 = vmatpush1.msra.mxu0 %v3572_v53  ;;  %v2511_v31 = vpop.permute.xlu0 %2510  ;;  %3193 = vmatprep.mubr.msk.f32.mxu1 %vm3307_vm0, %v3301_v3 }
 0x22a   :  { %3196 = vmatprep.subr.mxu1 %v3301_v3  ;;  %2253 = vmatprep.mubr.f32.mxu0 %v3301_v3  ;;  %p3284_p4 = pnand %p3283_p3, %p3277_p0 }
 0x22b   :  { %3194 = vmatmul.mubr.msk.f32.vlgmr.msra.gmra.mrb[22].mxu1 %vm53_vm2, %v3079_v21 }
 0x22c   :  { %3197 = vmatpush3.msra.mxu1 %v2033_v32  ;;  %v2346_v33 = vpop.permute.xlu1 %2345  ;;  %3198 = vmatprep.mubr.msk.f32.mxu1 %vm3307_vm0, %v3301_v3 }
 0x22d   :  { %v2350_v34 = vpop.permute.xlu0 %2349  ;;  %3201 = vmatprep.subr.mxu1 %v3301_v3  ;;  %v2352_v35 = vsel %vm46_vm1, %v2346_v33, %v2348_v24  ;;  %v2351_v37 = vsel %vm46_vm1, %v2344_v30, %v2346_v33 }
 0x22e   :  { %2360 = vmatprep.subr.mxu0 %v2352_v35  ;;  %v2353_v40 = vsel %vm46_vm1, %v2348_v24, %v2350_v34 }
 0x22f   :  { %3199 = vmatmul.mubr.msk.f32.vlgmr.msra.gmra.mrb[24].mxu1 %vm53_vm2, %v3082_v28 }
 0x230   :  { %3202 = vmatpush3.msra.mxu1 %v3586_v59  ;;  %3086 = vmatmul.mubr.msk.f32.vlgmr.msra.gmra.mrb[2].mxu0 %vm53_vm2, %v3085_v36  ;;  %v2507_v38 = vpop.permute.xlu1 %2506 }
 0x231   :  { %2361 = vmatpush1.msra.mxu0 %v2351_v37  ;;  %3203 = vmatprep.mubr.msk.f32.mxu1 %vm3307_vm0, %v3301_v3  ;;  %v2671_v39 = vpop.permute.xlu0 %2670 }
 0x232   :  { %3206 = vmatprep.subr.mxu1 %v3301_v3  ;;  %2424 = vmatprep.mubr.f32.mxu0 %v3301_v3 }
 0x233   :  { %3204 = vmatmul.mubr.msk.f32.vlgmr.msra.gmra.mrb[26].mxu1 %vm53_vm2, %v3085_v36 }
 0x234   :  { %3207 = vmatpush3.msra.mxu1 %v2353_v40  ;;  %v2509_v41 = vpop.permute.xlu1 %2508  ;;  %3208 = vmatprep.mubr.msk.f32.mxu1 %vm3307_vm0, %v3301_v3 }
 0x235   :  { %v2516_v43 = vsel %vm2514_vm14, %v2509_v41, %v2511_v31  ;;  %3211 = vmatprep.subr.mxu1 %v3301_v3  ;;  %v2515_v44 = vsel %vm2514_vm14, %v2507_v38, %v2509_v41  ;;  %v2673_v45 = vpop.permute.xlu0 %2672 }
 0x236   :  { %2524 = vmatprep.subr.mxu0 %v2516_v43  ;;  %v2678_v52 = vsel %vm516_vm4, %v2671_v39, %v2673_v45 }
 0x237   :  { %3209 = vmatmul.mubr.msk.f32.vlgmr.msra.gmra.mrb[28].mxu1 %vm53_vm2, %v3088_v42 }
 0x238   :  { %3089 = vmatmul.mubr.msk.f32.vlgmr.msra.gmra.mrb[2].mxu0 %vm53_vm2, %v3088_v42  ;;  %v2513_v46 = vpop.permute.xlu1 %2512  ;;  %3213 = vmatprep.mubr.msk.f32.mxu1 %vm3307_vm0, %v3301_v3 }
 0x239   :  { %2525 = vmatpush1.msra.mxu0 %v2515_v44  ;;  %v2517_v48 = vsel %vm2514_vm14, %v2511_v31, %v2513_v46  ;;  %2588 = vmatprep.mubr.f32.mxu0 %v3301_v3  ;;  %v2836_v51 = vpop.permute.xlu0 %2835 }
 0x23a   :  { %3212 = vmatpush3.msra.mxu1 %v2517_v48 }
 0x23b   :  { %3214 = vmatmul.mubr.msk.f32.vlgmr.msra.gmra.mrb[30].mxu1 %vm53_vm2, %v3091_v47  ;;  %3216 = vmatprep.subr.mxu1 %v3301_v3 }
 0x23c   :  { %v2675_v49 = vpop.permute.xlu1 %2674  ;;  %3218 = vmatprep.mubr.msk.f32.mxu1 %vm3307_vm0, %v3301_v3 }
 0x23d   :  { %v2679_v50 = vsel %vm516_vm4, %v2673_v45, %v2675_v49  ;;  %v2840_v56 = vpop.permute.xlu0 %2839 }
 0x23e   :  { %2687 = vmatprep.subr.mxu0 %v2679_v50 }
 0x240   :  { %3092 = vmatmul.mubr.msk.f32.vlgmr.msra.gmra.mrb[2].mxu0 %vm53_vm2, %v3091_v47  ;;  %v2677_v53 = vpop.permute.xlu1 %2676 }
 0x241   :  { %2688 = vmatpush1.msra.mxu0 %v2678_v52  ;;  %v2680_v55 = vsel %vm516_vm4, %v2675_v49, %v2677_v53  ;;  %2751 = vmatprep.mubr.f32.mxu0 %v3301_v3 }
 0x242   :  { %3217 = vmatpush3.msra.mxu1 %v2680_v55 }
 0x243   :  { %3219 = vmatmul.mubr.msk.f32.vlgmr.msra.gmra.mrb[32].mxu1 %vm53_vm2, %v3094_v54  ;;  %3221 = vmatprep.subr.mxu1 %v3301_v3 }
 0x244   :  { %v2838_v57 = vpop.permute.xlu1 %2837  ;;  %3223 = vmatprep.mubr.msk.f32.mxu1 %vm3307_vm0, %v3301_v3 }
 0x245   :  { %v2843_v59 = vsel %vm680_vm5, %v2838_v57, %v2840_v56  ;;  %v2842_v60 = vsel %vm680_vm5, %v2836_v51, %v2838_v57 }
 0x246   :  { %2850 = vmatprep.subr.mxu0 %v2842_v60  ;;  %3222 = vmatpush3.msra.mxu1 %v2843_v59 }
 0x247   :  { %3224 = vmatmul.mubr.msk.f32.vlgmr.msra.gmra.mrb[34].mxu1 %vm53_vm2, %v3097_v58 }
 0x248   :  { %3095 = vmatmul.mubr.msk.f32.vlgmr.msra.gmra.mrb[2].mxu0 %vm53_vm2, %v3094_v54  ;;  %v2834_v61 = vpop.permute.xlu1 %2833 }
 0x249   :  { %v2841_v62 = vsel %vm680_vm5, %v2834_v61, %v2836_v51  ;;  %2914 = vmatprep.mubr.f32.mxu0 %v3301_v3 }
 0x24a   :  { %2851 = vmatpush1.msra.mxu0 %v2841_v62 }
 0x24c   :  { %v3012_v21 = vpop.permute.xlu1 %3011 }
 0x24e   :  { %v2998_v17 = vpop.permute.xlu0 %2997 }
 0x250   :  { %3098 = vmatmul.mubr.msk.f32.vlgmr.msra.gmra.mrb[2].mxu0 %vm53_vm2, %v3097_v58  ;;  %v3016_v26 = vpop.permute.xlu1 %3015 }
 0x252   :  { %v3014_v20 = vpop.permute.xlu0 %3013 }
 0x253   :  { %v3019_v37 = vsel %vm680_vm5, %v3012_v21, %v3014_v20  ;;  %v3020_v39 = vsel %vm680_vm5, %v3014_v20, %v3016_v26 }
 0x256   :  { %v3018_v25 = vpop.permute.xlu0 %3017 }
 0x257   :  { %v3021_v30 = vsel %vm680_vm5, %v3016_v26, %v3018_v25 }
 0x2ef   :  { %v1693_v63 = vpop.f32.mrb[18].mxu1 }
 0x2f0   :  { %v3185_v5 = vpop.f32.mrb[19].mxu1 }
 0x2fa   :  { %v1852_v6 = vpop.f32.mrb[20].mxu1 }
 0x2fb   :  { %v1853_v0 = vadd.f32 %v1852_v6, %v1693_v63  ;;  %v3190_v7 = vpop.f32.mrb[21].mxu1 }
 0x2fe   :  { %v2013_v4 = vpop.f32.mrb[22].mxu1 }
 0x2ff   :  { %v2019_v1 = vadd.f32 %v2013_v4, %v1853_v0  ;;  %v3195_v2 = vpop.f32.mrb[23].mxu1 }
 0x302   :  { %v2177_v8 = vpop.f32.mrb[24].mxu1 }
 0x303   :  { %v2183_v9 = vadd.f32 %v2177_v8, %v2019_v1  ;;  %v3200_v10 = vpop.f32.mrb[25].mxu1 }
 0x306   :  { %v2326_v11 = vpop.f32.mrb[26].mxu1 }
 0x307   :  { %v2332_v12 = vadd.f32 %v2326_v11, %v2183_v9  ;;  %v3205_v13 = vpop.f32.mrb[27].mxu1 }
 0x30a   :  { %v2497_v14 = vpop.f32.mrb[28].mxu1 }
 0x30b   :  { %v2503_v15 = vadd.f32 %v2497_v14, %v2332_v12  ;;  %v3210_v3 = vpop.f32.mrb[29].mxu1 }
 0x30e   :  { %v2661_v16 = vpop.f32.mrb[30].mxu1 }
 0x30f   :  { %v2667_v18 = vadd.f32 %v2661_v16, %v2503_v15  ;;  %v3215_v19 = vpop.f32.mrb[31].mxu1 }
 0x316   :  { %v2824_v22 = vpop.f32.mrb[32].mxu1 }
 0x317   :  { %v2830_v23 = vadd.f32 %v2824_v22, %v2667_v18  ;;  %v3220_v24 = vpop.f32.mrb[33].mxu1 }
 0x31a   :  { %v2987_v27 = vpop.f32.mrb[34].mxu1 }
 0x31b   :  { %v2993_v28 = vadd.f32 %v2987_v27, %v2830_v23  ;;  %v3225_v29 = vpop.f32.mrb[35].mxu1 }
 0x31d   :  { %v3002_v31 = vadd.f32 %v2998_v17, %v2993_v28 }
 0x31f   :  { %v3027_v32 = vadd.f32 %v3021_v30, %v3002_v31 }
 0x321   :  { %v3030_v33 = vmax.f32 %v3027_v32, 0.0 }
 0x323   :  { %3033 = vst [vmem:[#allocation3 + $0x10] sm:$0xff] %v3030_v33  ;;  %v2916_v34 = vpop.f32.mrb[2].mxu0 }
 0x324   :  { %v3000_v35 = vadd.f32 %v2998_v17, %v2916_v34  ;;  %v2918_v36 = vpop.f32.mrb[3].mxu0 }
 0x325   :  { %v3001_v38 = vadd.f32 %v2998_v17, %v2918_v36 }
 0x326   :  { %v3025_v40 = vadd.f32 %v3019_v37, %v3000_v35 }
 0x327   :  { %v3026_v41 = vadd.f32 %v3020_v39, %v3001_v38 }
 0x328   :  { %v3028_v42 = vmax.f32 %v3025_v40, 0.0 }
 0x329   :  { %v3029_v43 = vmax.f32 %v3026_v41, 0.0 }
 0x32a   :  { %3031 = vst [vmem:[#allocation3] sm:$0xff] %v3028_v42 }
 0x32b   :  { %3032 = vst [vmem:[#allocation3 + $0x8] sm:$0xff] %v3029_v43 }
 0x32c   :  { %3287 = shalt.err (!%p3284_p4)
}
 0x32d   :  { %s3288_s11 = scalar_lea.hbm %s3760_s6, 384 }
 0x32e   :  { %p3289_p5 = scmp.ne.s32.totalorder %s3760_s6, %s3288_s11  ;;  %p3292_p6 = scmp.lt.u32.totalorder %s3288_s11, %s3760_s6 }
 0x330   :  { %p3294_p7 = pnand %p3292_p6, %p3289_p5 }
 0x332   :  { %3297 = shalt.err (!%p3294_p7)
}
 0x333   :  { %3043 = dma.vmem_to_hbm [thread:$0]  %s3041_s8, 384, %s3760_s6, [#allocation4]  }
 0x334   :  { %3298 = dma.done.wait [#allocation4], 384  }
 0x335   :  { %3299 = vsyncadd [#allocation4], 4294966912 }
 0x336   :  { %3047 = vsyncpa [#allocation4], 1 }

</bundles_post_ra>
